<compile_context>
chip_gen: v5e
topology: v5e:2x2
jax: 0.10.0
libtpu: 0.0.40
codegen_flags: <defaults>
</compile_context>

<pallas_src>
import functools

import jax
import jax.numpy as jnp
from jax.experimental import pallas as pl
from jax.experimental.pallas import tpu as pltpu

_LANES = 128              # vreg lane width
_SUBLANES = 8             # f32 sublane count
_TILE = _SUBLANES * _LANES
_MAX_BLOCK_ROWS = 4096    # 4096x128 f32 = 2 MiB / array; ~23 MiB double-buffered
_MIN_SPLIT_ROWS = 512     # above this, force >=2 grid blocks (v7x megacore)
_VMEM_LIMIT_BYTES = 48 << 20


def _round_up(a, b):
    return -(-a // b) * b


def _elementwise_kernel(x_ref,
                        sum_ref, sub_ref, mul_ref, div_ref,
                        gt_ref, lt_ref, eq_ref):
    x = x_ref[...]
    s = x + 2.0
    sb = s - 3.0
    m = sb * 4.0
    d = m * 0.5  # bit-exact equivalent of m / 2.0 for floating point
    sum_ref[...] = s
    sub_ref[...] = sb
    mul_ref[...] = m
    div_ref[...] = d
    # Mask dtype is driven by the out_shape (bool preferred, int8 fallback).
    gt_ref[...] = (d > 5.0).astype(gt_ref.dtype)
    lt_ref[...] = (d < 10.0).astype(lt_ref.dtype)
    eq_ref[...] = (d == 6.0).astype(eq_ref.dtype)


@functools.partial(jax.jit, static_argnames=("mask_dtype", "max_block_rows"))
def _forward_impl(x, mask_dtype, max_block_rows=_MAX_BLOCK_ROWS):
    orig_shape = x.shape
    dtype = x.dtype
    total = x.size

    # dtype-aware minimal sublane tile (8 for f32, 16 for bf16, 32 for i8).
    itemsize = jnp.dtype(dtype).itemsize
    sublanes = max(_SUBLANES, 32 // max(1, itemsize))
    tile = sublanes * _LANES

    # Flatten to a lane-dense (rows, 128) view; pad only to one full tile
    # (at most tile-1 extra elements -- never a full block-multiple pad).
    padded_total = _round_up(total, tile)
    xf = x.reshape(-1)
    if padded_total != total:
        xf = jnp.pad(xf, (0, padded_total - total))
    rows = padded_total // _LANES
    x2 = xf.reshape(rows, _LANES)

    # Block-row selection:
    #   * big arrays: full 4096-row blocks, ragged last block (pl.cdiv grid)
    #   * mid arrays: split into >=2 blocks so both v7x TensorCores work
    #   * small arrays: single whole-array block
    if rows > max_block_rows:
        block_rows = max_block_rows
    elif rows >= _MIN_SPLIT_ROWS:
        block_rows = _round_up(-(-rows // 2), sublanes)
    else:
        block_rows = rows
    grid = (pl.cdiv(rows, block_rows),)

    spec = pl.BlockSpec((block_rows, _LANES), lambda i: (i, 0))
    f32_out = jax.ShapeDtypeStruct((rows, _LANES), dtype)
    msk_out = jax.ShapeDtypeStruct((rows, _LANES), mask_dtype)

    outs = pl.pallas_call(
        _elementwise_kernel,
        out_shape=(f32_out,) * 4 + (msk_out,) * 3,
        grid=grid,
        in_specs=[spec],
        out_specs=(spec,) * 7,
        compiler_params=pltpu.CompilerParams(
            dimension_semantics=("parallel",),
            vmem_limit_bytes=_VMEM_LIMIT_BYTES),
    )(x2)

    def unflat(a, target_dtype):
        a = a.reshape(-1)
        if padded_total != total:
            a = a[:total]
        a = a.reshape(orig_shape)
        return a if a.dtype == target_dtype else a.astype(target_dtype)

    s, sb, m, d, gt, lt, eq = outs
    return (unflat(s, dtype), unflat(sb, dtype), unflat(m, dtype),
            unflat(d, dtype),
            unflat(gt, jnp.bool_), unflat(lt, jnp.bool_), unflat(eq, jnp.bool_))


@jax.jit
def _xla_fallback(x):
    s = x + 2.0
    sb = s - 3.0
    m = sb * 4.0
    d = m / 2.0
    return (s, sb, m, d, d > 5.0, d < 10.0, d == 6.0)


_MASK_DTYPE = None


def _probe_mask_dtype():
    """Prefer bool mask outputs from the kernel; fall back to int8 if the
    installed Mosaic rejects bool stores."""
    global _MASK_DTYPE
    if _MASK_DTYPE is None:
        try:
            probe = jnp.zeros((_SUBLANES, _LANES), jnp.float32)
            jax.block_until_ready(_forward_impl(probe, jnp.bool_,
                                                _MAX_BLOCK_ROWS))
            _MASK_DTYPE = jnp.bool_
        except Exception:
            _MASK_DTYPE = jnp.int8
    return _MASK_DTYPE


def pt_module_forward(x):
    """Pallas TPU equivalent of PtModule.forward (7 outputs)."""
    if x.size < _TILE:
        # Below one (8,128) tile a pallas_call launch costs more than the
        # whole computation; a single XLA fusion handles it.
        return _xla_fallback(x)
    return _forward_impl(x, _probe_mask_dtype(), _MAX_BLOCK_ROWS)


if __name__ == "__main__":
    def reference(x):
        s = x + 2.0
        sb = s - 3.0
        m = sb * 4.0
        d = m / 2.0
        return (s, sb, m, d, d > 5.0, d < 10.0, d == 6.0)

    def check(got, x):
        refs = reference(x)
        assert len(got) == 7
        for g, r in zip(got, refs):
            assert g.shape == r.shape, (g.shape, r.shape)
            assert g.dtype == r.dtype, (g.dtype, r.dtype)
            if g.dtype == jnp.bool_:
                assert bool(jnp.array_equal(g, r)), "bool mask mismatch"
            else:
                assert bool(jnp.allclose(g, r, rtol=1e-6, atol=1e-6)), \
                    "float output mismatch"

    key = jax.random.PRNGKey(0)
    k1, k2, k3 = jax.random.split(key, 3)

    # Primary small test shape (NCHW): batch=2, channels=4, spatial 16x16.
    x1 = jax.random.normal(k1, (2, 4, 16, 16), dtype=jnp.float32) * 5.0
    out1 = jax.block_until_ready(pt_module_forward(x1))
    check(out1, x1)

    # Non-tile-aligned shape: exercises the tail-pad + output-slice path.
    x2 = jax.random.normal(k2, (3, 5, 7, 11), dtype=jnp.float32) * 5.0
    out2 = jax.block_until_ready(pt_module_forward(x2))
    check(out2, x2)

    # Multi-block grid with a ragged last block (force tiny blocks so the
    # gridded path is exercised cheaply).
    x3 = jax.random.normal(k3, (5, 8, 128), dtype=jnp.float32) * 5.0
    out3 = jax.block_until_ready(
        _forward_impl(x3, _probe_mask_dtype(), 16))
    check(out3, x3)

    print("KERNEL_OK")
</pallas_src>

<mosaic_0001>
module attributes {stable_mosaic.version = 11 : i64} {
  func.func @_elementwise_kernel(%arg0: i32, %arg1: memref<8x128xf32, #tpu.memory_space<vmem>>, %arg2: memref<8x128xf32, #tpu.memory_space<vmem>>, %arg3: memref<8x128xf32, #tpu.memory_space<vmem>>, %arg4: memref<8x128xf32, #tpu.memory_space<vmem>>, %arg5: memref<8x128xf32, #tpu.memory_space<vmem>>, %arg6: memref<8x128xi32, #tpu.memory_space<vmem>>, %arg7: memref<8x128xi32, #tpu.memory_space<vmem>>, %arg8: memref<8x128xi32, #tpu.memory_space<vmem>>) attributes {dimension_semantics = [#tpu.dimension_semantics<parallel>], iteration_bounds = array<i64: 1>, scalar_prefetch = 0 : i64, scratch_operands = 0 : i64, tpu.core_type = #tpu.core_type<tc>, window_params = [{transform_indices = @transform_0, window_bounds = array<i64: 8, 128>}, {transform_indices = @transform_1, window_bounds = array<i64: 8, 128>}, {transform_indices = @transform_2, window_bounds = array<i64: 8, 128>}, {transform_indices = @transform_3, window_bounds = array<i64: 8, 128>}, {transform_indices = @transform_4, window_bounds = array<i64: 8, 128>}, {transform_indices = @transform_5, window_bounds = array<i64: 8, 128>}, {transform_indices = @transform_6, window_bounds = array<i64: 8, 128>}, {transform_indices = @transform_7, window_bounds = array<i64: 8, 128>}]} {
    %c0 = arith.constant 0 : index
    %c0_0 = arith.constant 0 : index
    %0 = vector.load %arg1[%c0, %c0_0] : memref<8x128xf32, #tpu.memory_space<vmem>>, vector<8x128xf32>
    %cst = arith.constant 2.000000e+00 : f32
    %1 = vector.broadcast %cst : f32 to vector<8x128xf32>
    %2 = arith.addf %0, %1 : vector<8x128xf32>
    %cst_1 = arith.constant 3.000000e+00 : f32
    %3 = vector.broadcast %cst_1 : f32 to vector<8x128xf32>
    %4 = arith.subf %2, %3 : vector<8x128xf32>
    %cst_2 = arith.constant 4.000000e+00 : f32
    %5 = vector.broadcast %cst_2 : f32 to vector<8x128xf32>
    %6 = arith.mulf %4, %5 : vector<8x128xf32>
    %cst_3 = arith.constant 5.000000e-01 : f32
    %7 = vector.broadcast %cst_3 : f32 to vector<8x128xf32>
    %8 = arith.mulf %6, %7 : vector<8x128xf32>
    %c0_4 = arith.constant 0 : index
    %c0_5 = arith.constant 0 : index
    %9 = vector.load %arg2[%c0_4, %c0_5] : memref<8x128xf32, #tpu.memory_space<vmem>>, vector<8x128xf32>
    tpu.vector_store %arg2[%c0_4, %c0_5], %2 {strides = array<i32>} : memref<8x128xf32, #tpu.memory_space<vmem>>, vector<8x128xf32>,
    %c0_6 = arith.constant 0 : index
    %c0_7 = arith.constant 0 : index
    %10 = vector.load %arg3[%c0_6, %c0_7] : memref<8x128xf32, #tpu.memory_space<vmem>>, vector<8x128xf32>
    tpu.vector_store %arg3[%c0_6, %c0_7], %4 {strides = array<i32>} : memref<8x128xf32, #tpu.memory_space<vmem>>, vector<8x128xf32>,
    %c0_8 = arith.constant 0 : index
    %c0_9 = arith.constant 0 : index
    %11 = vector.load %arg4[%c0_8, %c0_9] : memref<8x128xf32, #tpu.memory_space<vmem>>, vector<8x128xf32>
    tpu.vector_store %arg4[%c0_8, %c0_9], %6 {strides = array<i32>} : memref<8x128xf32, #tpu.memory_space<vmem>>, vector<8x128xf32>,
    %c0_10 = arith.constant 0 : index
    %c0_11 = arith.constant 0 : index
    %12 = vector.load %arg5[%c0_10, %c0_11] : memref<8x128xf32, #tpu.memory_space<vmem>>, vector<8x128xf32>
    tpu.vector_store %arg5[%c0_10, %c0_11], %8 {strides = array<i32>} : memref<8x128xf32, #tpu.memory_space<vmem>>, vector<8x128xf32>,
    %cst_12 = arith.constant 5.000000e+00 : f32
    %13 = vector.broadcast %cst_12 : f32 to vector<8x128xf32>
    %14 = arith.cmpf ogt, %8, %13 : vector<8x128xf32>
    %c0_13 = arith.constant 0 : index
    %c0_14 = arith.constant 0 : index
    %15 = vector.load %arg6[%c0_13, %c0_14] : memref<8x128xi32, #tpu.memory_space<vmem>>, vector<8x128xi32>
    %16 = arith.extui %14 : vector<8x128xi1> to vector<8x128xi32>
    %cst_15 = arith.constant dense<0> : vector<8x128xi32>
    %17 = arith.cmpi ne, %15, %cst_15 : vector<8x128xi32>
    tpu.vector_store %arg6[%c0_13, %c0_14], %16 {strides = array<i32>} : memref<8x128xi32, #tpu.memory_space<vmem>>, vector<8x128xi32>,
    %cst_16 = arith.constant 1.000000e+01 : f32
    %18 = vector.broadcast %cst_16 : f32 to vector<8x128xf32>
    %19 = arith.cmpf olt, %8, %18 : vector<8x128xf32>
    %c0_17 = arith.constant 0 : index
    %c0_18 = arith.constant 0 : index
    %20 = vector.load %arg7[%c0_17, %c0_18] : memref<8x128xi32, #tpu.memory_space<vmem>>, vector<8x128xi32>
    %21 = arith.extui %19 : vector<8x128xi1> to vector<8x128xi32>
    %cst_19 = arith.constant dense<0> : vector<8x128xi32>
    %22 = arith.cmpi ne, %20, %cst_19 : vector<8x128xi32>
    tpu.vector_store %arg7[%c0_17, %c0_18], %21 {strides = array<i32>} : memref<8x128xi32, #tpu.memory_space<vmem>>, vector<8x128xi32>,
    %cst_20 = arith.constant 6.000000e+00 : f32
    %23 = vector.broadcast %cst_20 : f32 to vector<8x128xf32>
    %24 = arith.cmpf oeq, %8, %23 : vector<8x128xf32>
    %c0_21 = arith.constant 0 : index
    %c0_22 = arith.constant 0 : index
    %25 = vector.load %arg8[%c0_21, %c0_22] : memref<8x128xi32, #tpu.memory_space<vmem>>, vector<8x128xi32>
    %26 = arith.extui %24 : vector<8x128xi1> to vector<8x128xi32>
    %cst_23 = arith.constant dense<0> : vector<8x128xi32>
    %27 = arith.cmpi ne, %25, %cst_23 : vector<8x128xi32>
    tpu.vector_store %arg8[%c0_21, %c0_22], %26 {strides = array<i32>} : memref<8x128xi32, #tpu.memory_space<vmem>>, vector<8x128xi32>,
    return
  }
  func.func @transform_0(%arg0: i32) -> (i32, i32) {
    %c0_i32 = arith.constant 0 : i32
    %c0_i32_0 = arith.constant 0 : i32
    return %arg0, %c0_i32 : i32, i32
  }
  func.func @transform_1(%arg0: i32) -> (i32, i32) {
    %c0_i32 = arith.constant 0 : i32
    %c0_i32_0 = arith.constant 0 : i32
    return %arg0, %c0_i32 : i32, i32
  }
  func.func @transform_2(%arg0: i32) -> (i32, i32) {
    %c0_i32 = arith.constant 0 : i32
    %c0_i32_0 = arith.constant 0 : i32
    return %arg0, %c0_i32 : i32, i32
  }
  func.func @transform_3(%arg0: i32) -> (i32, i32) {
    %c0_i32 = arith.constant 0 : i32
    %c0_i32_0 = arith.constant 0 : i32
    return %arg0, %c0_i32 : i32, i32
  }
  func.func @transform_4(%arg0: i32) -> (i32, i32) {
    %c0_i32 = arith.constant 0 : i32
    %c0_i32_0 = arith.constant 0 : i32
    return %arg0, %c0_i32 : i32, i32
  }
  func.func @transform_5(%arg0: i32) -> (i32, i32) {
    %c0_i32 = arith.constant 0 : i32
    %c0_i32_0 = arith.constant 0 : i32
    return %arg0, %c0_i32 : i32, i32
  }
  func.func @transform_6(%arg0: i32) -> (i32, i32) {
    %c0_i32 = arith.constant 0 : i32
    %c0_i32_0 = arith.constant 0 : i32
    return %arg0, %c0_i32 : i32, i32
  }
  func.func @transform_7(%arg0: i32) -> (i32, i32) {
    %c0_i32 = arith.constant 0 : i32
    %c0_i32_0 = arith.constant 0 : i32
    return %arg0, %c0_i32 : i32, i32
  }
}

module attributes {stable_mosaic.version = 11 : i64} {
  func.func @_elementwise_kernel(%arg0: i32, %arg1: memref<16x128xf32, #tpu.memory_space<vmem>>, %arg2: memref<16x128xf32, #tpu.memory_space<vmem>>, %arg3: memref<16x128xf32, #tpu.memory_space<vmem>>, %arg4: memref<16x128xf32, #tpu.memory_space<vmem>>, %arg5: memref<16x128xf32, #tpu.memory_space<vmem>>, %arg6: memref<16x128xi8, #tpu.memory_space<vmem>>, %arg7: memref<16x128xi8, #tpu.memory_space<vmem>>, %arg8: memref<16x128xi8, #tpu.memory_space<vmem>>) attributes {dimension_semantics = [#tpu.dimension_semantics<parallel>], iteration_bounds = array<i64: 1>, scalar_prefetch = 0 : i64, scratch_operands = 0 : i64, tpu.core_type = #tpu.core_type<tc>, window_params = [{transform_indices = @transform_0, window_bounds = array<i64: 16, 128>}, {transform_indices = @transform_1, window_bounds = array<i64: 16, 128>}, {transform_indices = @transform_2, window_bounds = array<i64: 16, 128>}, {transform_indices = @transform_3, window_bounds = array<i64: 16, 128>}, {transform_indices = @transform_4, window_bounds = array<i64: 16, 128>}, {transform_indices = @transform_5, window_bounds = array<i64: 16, 128>}, {transform_indices = @transform_6, window_bounds = array<i64: 16, 128>}, {transform_indices = @transform_7, window_bounds = array<i64: 16, 128>}]} {
    %c0 = arith.constant 0 : index
    %c0_0 = arith.constant 0 : index
    %0 = vector.load %arg1[%c0, %c0_0] : memref<16x128xf32, #tpu.memory_space<vmem>>, vector<16x128xf32>
    %cst = arith.constant 2.000000e+00 : f32
    %1 = vector.broadcast %cst : f32 to vector<16x128xf32>
    %2 = arith.addf %0, %1 : vector<16x128xf32>
    %cst_1 = arith.constant 3.000000e+00 : f32
    %3 = vector.broadcast %cst_1 : f32 to vector<16x128xf32>
    %4 = arith.subf %2, %3 : vector<16x128xf32>
    %cst_2 = arith.constant 4.000000e+00 : f32
    %5 = vector.broadcast %cst_2 : f32 to vector<16x128xf32>
    %6 = arith.mulf %4, %5 : vector<16x128xf32>
    %cst_3 = arith.constant 5.000000e-01 : f32
    %7 = vector.broadcast %cst_3 : f32 to vector<16x128xf32>
    %8 = arith.mulf %6, %7 : vector<16x128xf32>
    %c0_4 = arith.constant 0 : index
    %c0_5 = arith.constant 0 : index
    %9 = vector.load %arg2[%c0_4, %c0_5] : memref<16x128xf32, #tpu.memory_space<vmem>>, vector<16x128xf32>
    tpu.vector_store %arg2[%c0_4, %c0_5], %2 {strides = array<i32>} : memref<16x128xf32, #tpu.memory_space<vmem>>, vector<16x128xf32>,
    %c0_6 = arith.constant 0 : index
    %c0_7 = arith.constant 0 : index
    %10 = vector.load %arg3[%c0_6, %c0_7] : memref<16x128xf32, #tpu.memory_space<vmem>>, vector<16x128xf32>
    tpu.vector_store %arg3[%c0_6, %c0_7], %4 {strides = array<i32>} : memref<16x128xf32, #tpu.memory_space<vmem>>, vector<16x128xf32>,
    %c0_8 = arith.constant 0 : index
    %c0_9 = arith.constant 0 : index
    %11 = vector.load %arg4[%c0_8, %c0_9] : memref<16x128xf32, #tpu.memory_space<vmem>>, vector<16x128xf32>
    tpu.vector_store %arg4[%c0_8, %c0_9], %6 {strides = array<i32>} : memref<16x128xf32, #tpu.memory_space<vmem>>, vector<16x128xf32>,
    %c0_10 = arith.constant 0 : index
    %c0_11 = arith.constant 0 : index
    %12 = vector.load %arg5[%c0_10, %c0_11] : memref<16x128xf32, #tpu.memory_space<vmem>>, vector<16x128xf32>
    tpu.vector_store %arg5[%c0_10, %c0_11], %8 {strides = array<i32>} : memref<16x128xf32, #tpu.memory_space<vmem>>, vector<16x128xf32>,
    %cst_12 = arith.constant 5.000000e+00 : f32
    %13 = vector.broadcast %cst_12 : f32 to vector<16x128xf32>
    %14 = arith.cmpf ogt, %8, %13 : vector<16x128xf32>
    %15 = arith.extui %14 : vector<16x128xi1> to vector<16x128xi8>
    %c0_13 = arith.constant 0 : index
    %c0_14 = arith.constant 0 : index
    %16 = vector.load %arg6[%c0_13, %c0_14] : memref<16x128xi8, #tpu.memory_space<vmem>>, vector<16x128xi8>
    tpu.vector_store %arg6[%c0_13, %c0_14], %15 {strides = array<i32>} : memref<16x128xi8, #tpu.memory_space<vmem>>, vector<16x128xi8>,
    %cst_15 = arith.constant 1.000000e+01 : f32
    %17 = vector.broadcast %cst_15 : f32 to vector<16x128xf32>
    %18 = arith.cmpf olt, %8, %17 : vector<16x128xf32>
    %19 = arith.extui %18 : vector<16x128xi1> to vector<16x128xi8>
    %c0_16 = arith.constant 0 : index
    %c0_17 = arith.constant 0 : index
    %20 = vector.load %arg7[%c0_16, %c0_17] : memref<16x128xi8, #tpu.memory_space<vmem>>, vector<16x128xi8>
    tpu.vector_store %arg7[%c0_16, %c0_17], %19 {strides = array<i32>} : memref<16x128xi8, #tpu.memory_space<vmem>>, vector<16x128xi8>,
    %cst_18 = arith.constant 6.000000e+00 : f32
    %21 = vector.broadcast %cst_18 : f32 to vector<16x128xf32>
    %22 = arith.cmpf oeq, %8, %21 : vector<16x128xf32>
    %23 = arith.extui %22 : vector<16x128xi1> to vector<16x128xi8>
    %c0_19 = arith.constant 0 : index
    %c0_20 = arith.constant 0 : index
    %24 = vector.load %arg8[%c0_19, %c0_20] : memref<16x128xi8, #tpu.memory_space<vmem>>, vector<16x128xi8>
    tpu.vector_store %arg8[%c0_19, %c0_20], %23 {strides = array<i32>} : memref<16x128xi8, #tpu.memory_space<vmem>>, vector<16x128xi8>,
    return
  }
  func.func @transform_0(%arg0: i32) -> (i32, i32) {
    %c0_i32 = arith.constant 0 : i32
    %c0_i32_0 = arith.constant 0 : i32
    return %arg0, %c0_i32 : i32, i32
  }
  func.func @transform_1(%arg0: i32) -> (i32, i32) {
    %c0_i32 = arith.constant 0 : i32
    %c0_i32_0 = arith.constant 0 : i32
    return %arg0, %c0_i32 : i32, i32
  }
  func.func @transform_2(%arg0: i32) -> (i32, i32) {
    %c0_i32 = arith.constant 0 : i32
    %c0_i32_0 = arith.constant 0 : i32
    return %arg0, %c0_i32 : i32, i32
  }
  func.func @transform_3(%arg0: i32) -> (i32, i32) {
    %c0_i32 = arith.constant 0 : i32
    %c0_i32_0 = arith.constant 0 : i32
    return %arg0, %c0_i32 : i32, i32
  }
  func.func @transform_4(%arg0: i32) -> (i32, i32) {
    %c0_i32 = arith.constant 0 : i32
    %c0_i32_0 = arith.constant 0 : i32
    return %arg0, %c0_i32 : i32, i32
  }
  func.func @transform_5(%arg0: i32) -> (i32, i32) {
    %c0_i32 = arith.constant 0 : i32
    %c0_i32_0 = arith.constant 0 : i32
    return %arg0, %c0_i32 : i32, i32
  }
  func.func @transform_6(%arg0: i32) -> (i32, i32) {
    %c0_i32 = arith.constant 0 : i32
    %c0_i32_0 = arith.constant 0 : i32
    return %arg0, %c0_i32 : i32, i32
  }
  func.func @transform_7(%arg0: i32) -> (i32, i32) {
    %c0_i32 = arith.constant 0 : i32
    %c0_i32_0 = arith.constant 0 : i32
    return %arg0, %c0_i32 : i32, i32
  }
}

</mosaic_0001>

<bundles_post_ra>
// kernel: _forward_impl.1
= control target key start
LH: loop header
LB: loop body
LE: loop exit
PB: predicated region body
PF: predicated region fallthrough
CT: control target
= control target key end

     0   :  { %13 = vsyncpa [#allocation3], 0  ;;  %s331_s0 = inlined_call_operand.hbm [shape: f32[8,128], index: 0, kind: input, shape index: {}]   ;;  %s332_s1 = inlined_call_operand.hbm [shape: f32[8,128], index: 1, kind: output, shape index: {0}]   ;;  %s333_s2 = inlined_call_operand.hbm [shape: f32[8,128], index: 2, kind: output, shape index: {1}]   ;;  %s334_s3 = inlined_call_operand.hbm [shape: f32[8,128], index: 3, kind: output, shape index: {2}]   ;;  %s335_s4 = inlined_call_operand.hbm [shape: f32[8,128], index: 4, kind: output, shape index: {3}]   ;;  %s336_s5 = inlined_call_operand.vmem [shape: s32[8,128], index: 5, kind: output, shape index: {4}]   ;;  %s337_s6 = inlined_call_operand.vmem [shape: s32[8,128], index: 6, kind: output, shape index: {5}]   ;;  %s338_s7 = inlined_call_operand.vmem [shape: s32[8,128], index: 7, kind: output, shape index: {6}]  }
   0x1   :  { %14 = vsyncpa [#allocation4], 0 }
   0x2   :  { %15 = vsyncpa [#allocation7], 0 }
   0x3   :  { %16 = vsyncpa [#allocation10], 0  ;;  %s22_s26 = sshll.u32 %s331_s0, 4  ;;  %s261_s27 = smov [#allocation2]   ;;  %s23_s26 = int_to_ptr.hbm [resolvable:$true] %s22_s26 }
   0x4   :  { %s24_s28 = sshll.u32 %s261_s27, 4  ;;  %s25_s28 = int_to_ptr.vmem [resolvable:$true] %s24_s28 }
   0x5   :  { %27 = dma.hbm_to_vmem [thread:$0]  %s23_s26, 128, %s25_s28, [#allocation3]  }
   0x6   :  { %253 = dma.done.wait [#allocation3], 128  }
   0x7   :  { %254 = vsyncadd [#allocation3], 4294967168  ;;  %s68_s8 = sshll.u32 %s333_s2, 4  ;;  %s262_s9 = smov [#allocation6]   ;;  %v32_v0 = vld [vmem:[#allocation2] sm:$0xff]  ;;  %v266_v5 = vmov 0   ;;  %s69_s8 = int_to_ptr.hbm [resolvable:$true] %s68_s8 }
   0x8   :  { %s66_s10 = sshll.u32 %s262_s9, 4  ;;  %s263_s11 = smov [#allocation5]   ;;  %v33_v1 = vadd.f32 2.0, %v32_v0  ;;  %s67_s10 = int_to_ptr.vmem [resolvable:$true] %s66_s10 }
   0x9   :  { %s55_s12 = sshll.u32 %s263_s11, 4  ;;  %s57_s15 = sshll.u32 %s332_s1, 4  ;;  %s56_s12 = int_to_ptr.vmem [resolvable:$true] %s55_s12  ;;  %s58_s15 = int_to_ptr.hbm [resolvable:$true] %s57_s15 }
   0xa   :  { %s264_s0 = smov [#allocation8]   ;;  %s79_s2 = sshll.u32 %s334_s3, 4  ;;  %v126_v2 = vadd.f32 -3.0, %v33_v1  ;;  %37 = vst [vmem:[#allocation5] sm:$0xff] %v33_v1  ;;  %s80_s2 = int_to_ptr.hbm [resolvable:$true] %s79_s2 }
   0xb   :  { %s77_s16 = sshll.u32 %s264_s0, 4  ;;  %s265_s19 = smov [#allocation9]   ;;  %s78_s16 = int_to_ptr.vmem [resolvable:$true] %s77_s16 }
   0xc   :  { %s88_s20 = sshll.u32 %s265_s19, 4  ;;  %s90_s1 = sshll.u32 %s335_s4, 4  ;;  %38 = vst [vmem:[#allocation6] sm:$0xff] %v126_v2  ;;  %v35_v3 = vmul.f32 4.0, %v126_v2  ;;  %s89_s20 = int_to_ptr.vmem [resolvable:$true] %s88_s20  ;;  %s91_s1 = int_to_ptr.hbm [resolvable:$true] %s90_s1 }
   0xd   :  { %60 = dma.vmem_to_hbm [thread:$0]  %s56_s12, 128, %s58_s15, [#allocation4]  }
   0xe   :  { %71 = dma.vmem_to_hbm [thread:$0]  %s67_s10, 128, %s69_s8, [#allocation7]   ;;  %v36_v4 = vmul.f32 0.5, %v35_v3  ;;  %39 = vst [vmem:[#allocation8] sm:$0xff] %v35_v3 }
   0xf   :  { %82 = dma.vmem_to_hbm [thread:$0]  %s78_s16, 128, %s80_s2, [#allocation7]  }
  0x10   :  { %40 = vst [vmem:[#allocation9] sm:$0xff] %v36_v4  ;;  %vm41_vm0 = vcmp.gt.f32.partialorder %v36_v4, 5.0  ;;  %vm44_vm1 = vcmp.lt.f32.partialorder %v36_v4, 10.0  ;;  %vm47_vm2 = vcmp.eq.f32.partialorder %v36_v4, 6.0 }
  0x11   :  { %v42_v6 = vsel %vm41_vm0, 1, %v266_v5  ;;  %v45_v7 = vsel %vm44_vm1, 1, %v266_v5  ;;  %v48_v8 = vsel %vm47_vm2, 1, %v266_v5  ;;  %93 = dma.vmem_to_hbm [thread:$0]  %s89_s20, 128, %s91_s1, [#allocation10]  }
  0x12   :  { %43 = vst [vmem:[%s336_s5] sm:$0xff] %v42_v6 }
  0x13   :  { %46 = vst [vmem:[%s337_s6] sm:$0xff] %v45_v7 }
  0x14   :  { %49 = vst [vmem:[%s338_s7] sm:$0xff] %v48_v8 }
  0x15   :  { %255 = dma.done.wait [#allocation4], 128  }
  0x16   :  { %256 = vsyncadd [#allocation4], 4294967168 }
  0x17   :  { %257 = dma.done.wait [#allocation7], 256  }
  0x18   :  { %258 = vsyncadd [#allocation7], 4294967040 }
  0x19   :  { %259 = dma.done.wait [#allocation10], 128  }
  0x1a   :  { %260 = vsyncadd [#allocation10], 4294967168 }
  0x1b   :  { %122 = vsyncpa [#allocation3], 1 }
  0x1c   :  { %123 = vsyncpa [#allocation4], 1 }
  0x1d   :  { %124 = vsyncpa [#allocation7], 1 }
  0x1e   :  { %125 = vsyncpa [#allocation10], 1 }

// kernel: _forward_impl.1
= control target key start
LH: loop header
LB: loop body
LE: loop exit
PB: predicated region body
PF: predicated region fallthrough
CT: control target
= control target key end

     0   :  { %v114_v10 = vmov 0   ;;  %s203_s0 = inlined_call_operand.vmem [shape: f32[16,128], index: 0, kind: input, shape index: {}]   ;;  %s204_s1 = inlined_call_operand.vmem [shape: f32[16,128], index: 1, kind: output, shape index: {0}]   ;;  %s205_s2 = inlined_call_operand.vmem [shape: f32[16,128], index: 2, kind: output, shape index: {1}]   ;;  %s206_s3 = inlined_call_operand.vmem [shape: f32[16,128], index: 3, kind: output, shape index: {2}]   ;;  %s207_s4 = inlined_call_operand.vmem [shape: f32[16,128], index: 4, kind: output, shape index: {3}]   ;;  %s208_s5 = inlined_call_operand.vmem [shape: s8[16,128], index: 5, kind: output, shape index: {4}]   ;;  %s209_s6 = inlined_call_operand.vmem [shape: s8[16,128], index: 6, kind: output, shape index: {5}]   ;;  %s210_s7 = inlined_call_operand.vmem [shape: s8[16,128], index: 7, kind: output, shape index: {6}]  }
   0x1   :  { %v17_v0 = vld [vmem:[%s203_s0] sm:$0xff]  ;;  %v18_v1 = vld [vmem:[%s203_s0 + $0x8] sm:$0xff] }
   0x2   :  { %v19_v2 = vadd.f32 2.0, %v17_v0  ;;  %v20_v3 = vadd.f32 2.0, %v18_v1 }
   0x4   :  { %27 = vst [vmem:[%s204_s1] sm:$0xff] %v19_v2  ;;  %v111_v4 = vadd.f32 -3.0, %v19_v2  ;;  %v112_v5 = vadd.f32 -3.0, %v20_v3 }
   0x5   :  { %28 = vst [vmem:[%s204_s1 + $0x8] sm:$0xff] %v20_v3 }
   0x6   :  { %29 = vst [vmem:[%s205_s2] sm:$0xff] %v111_v4  ;;  %v23_v6 = vmul.f32 4.0, %v111_v4  ;;  %v24_v7 = vmul.f32 4.0, %v112_v5 }
   0x7   :  { %30 = vst [vmem:[%s205_s2 + $0x8] sm:$0xff] %v112_v5 }
   0x8   :  { %v25_v8 = vmul.f32 0.5, %v23_v6  ;;  %31 = vst [vmem:[%s206_s3] sm:$0xff] %v23_v6  ;;  %v26_v9 = vmul.f32 0.5, %v24_v7 }
   0x9   :  { %32 = vst [vmem:[%s206_s3 + $0x8] sm:$0xff] %v24_v7 }
   0xa   :  { %33 = vst [vmem:[%s207_s4] sm:$0xff] %v25_v8  ;;  %vm35_vm0 = vcmp.gt.f32.partialorder %v25_v8, 5.0  ;;  %vm36_vm1 = vcmp.gt.f32.partialorder %v26_v9, 5.0  ;;  %vm51_vm2 = vcmp.lt.f32.partialorder %v25_v8, 10.0  ;;  %vm52_vm3 = vcmp.lt.f32.partialorder %v26_v9, 10.0 }
   0xb   :  { %34 = vst [vmem:[%s207_s4 + $0x8] sm:$0xff] %v26_v9  ;;  %vm37_vm4 = vmpackc.low %vm36_vm1, %vm35_vm0  ;;  %vm67_vm5 = vcmp.eq.f32.partialorder %v25_v8, 6.0  ;;  %vm68_vm6 = vcmp.eq.f32.partialorder %v26_v9, 6.0 }
   0xc   :  { %v38_v11 = vsel %vm37_vm4, 16711935, %v114_v10  ;;  %vm53_vm7 = vmpackc.low %vm52_vm3, %vm51_vm2 }
   0xd   :  { %v40_v12 = vpack.c.b8 %v38_v11, %v38_v11  ;;  %v54_v13 = vsel %vm53_vm7, 16711935, %v114_v10  ;;  %vm69_vm8 = vmpackc.low %vm68_vm6, %vm67_vm5 }
   0xe   :  { %v56_v14 = vpack.c.b8 %v54_v13, %v54_v13  ;;  %v70_v15 = vsel %vm69_vm8, 16711935, %v114_v10 }
   0xf   :  { %vm41_vm9 = vnez %v40_v12  ;;  %v72_v16 = vpack.c.b8 %v70_v15, %v70_v15 }
  0x10   :  { %v42_v17 = vsel %vm41_vm9, 16843009, %v114_v10  ;;  %vm57_vm10 = vnez %v56_v14 }
  0x11   :  { %v43_v18 = vunpack.c.0.s8 %v42_v17  ;;  %v44_v19 = vunpack.c.1.s8 %v42_v17  ;;  %v58_v20 = vsel %vm57_vm10, 16843009, %v114_v10  ;;  %vm73_vm11 = vnez %v72_v16 }
  0x12   :  { %v59_v21 = vunpack.c.0.s8 %v58_v20  ;;  %v60_v22 = vunpack.c.1.s8 %v58_v20  ;;  %v74_v23 = vsel %vm73_vm11, 16843009, %v114_v10 }
  0x13   :  { %v45_v24 = vpack.c.b16 %v43_v18, %v43_v18  ;;  %v47_v25 = vpack.c.b16 %v44_v19, %v44_v19  ;;  %v75_v26 = vunpack.c.0.s8 %v74_v23  ;;  %v76_v27 = vunpack.c.1.s8 %v74_v23 }
  0x14   :  { %v61_v28 = vpack.c.b16 %v59_v21, %v59_v21  ;;  %v63_v29 = vpack.c.b16 %v60_v22, %v60_v22 }
  0x15   :  { %v46_v30 = vpack.c.b8 %v45_v24, %v45_v24  ;;  %v48_v31 = vpack.c.b8 %v47_v25, %v47_v25  ;;  %v77_v32 = vpack.c.b16 %v75_v26, %v75_v26  ;;  %v79_v33 = vpack.c.b16 %v76_v27, %v76_v27 }
  0x16   :  { %v62_v34 = vpack.c.b8 %v61_v28, %v61_v28  ;;  %v64_v35 = vpack.c.b8 %v63_v29, %v63_v29 }
  0x17   :  { %49 = vst [vmem:[%s208_s5] sm:$0x3] %v46_v30  ;;  %v78_v36 = vpack.c.b8 %v77_v32, %v77_v32  ;;  %v80_v37 = vpack.c.b8 %v79_v33, %v79_v33 }
  0x18   :  { %50 = vst [vmem:[%s208_s5 + $0x2] sm:$0x3] %v48_v31 }
  0x19   :  { %65 = vst [vmem:[%s209_s6] sm:$0x3] %v62_v34 }
  0x1a   :  { %66 = vst [vmem:[%s209_s6 + $0x2] sm:$0x3] %v64_v35 }
  0x1b   :  { %81 = vst [vmem:[%s210_s7] sm:$0x3] %v78_v36 }
  0x1c   :  { %82 = vst [vmem:[%s210_s7 + $0x2] sm:$0x3] %v80_v37 }

</bundles_post_ra>
